<compile_context>
chip_gen: v5e
topology: v5e:2x2
jax: 0.10.0
libtpu: 0.0.40
codegen_flags: <defaults>
</compile_context>

<pallas_src>
import numpy as np
import jax
import jax.numpy as jnp
from jax.experimental import pallas as pl
from jax.experimental.pallas import tpu as pltpu

# -------------------- module hyper-parameters (PhaseHarmonicCov(N, Q, K, T)) --
N = 4            # octaves
Q = 1            # wavelets per octave
K = 3            # number of phase harmonics (k_type='linear' -> k = 0..K-1)
T = 32           # temporal support
C = 1            # channels (module's forward .squeeze(3) assumes C == 1)
B = 2            # batch
HIGH_FREQ = 0.5
NDIAG = 2
TOL = 2.0
EPS = 1e-12

NF = N * Q + 1           # number of wavelets + low-pass
NF_PAD = 8               # filter rows padded to one sublane tile
KR_PAD = K * NF_PAD      # padded (k, lambda) rows, k-major
BT = B * T               # lane axis = (batch, time), batch-major (64 lanes)
LANE = 128               # lane-dense output slab width
XI2DELTA = 1.0 / 3.0     # battle-lemarie branch: delta0 = xi0 / 3


# -------------------- deterministic synthetic filter bank ---------------------
# The xi grid and all index bookkeeping follow the module exactly; the filter
# *values* are deterministic synthetic Gaussians in the Fourier domain
# (the battle-lemarie tables come from an external library).
def build_filters():
    xi = [HIGH_FREQ * 2.0 ** (-j / Q) for j in range(N * Q)]
    omega = np.arange(T) / T
    psi = []
    for x0 in xi:
        sig = x0 / 4.0
        psi.append(np.exp(-((omega - x0) ** 2) / (2.0 * sig ** 2)))
    sig_low = xi[-1] / 2.0
    d = np.minimum(omega, 1.0 - omega)
    phi = np.exp(-(d ** 2) / (2.0 * sig_low ** 2))[None, :]
    filt_hat = np.concatenate([np.stack(psi, 0), phi], axis=0)  # (NF, T), real
    xi = xi + [0.0]                                             # low-pass xi
    return np.array(xi), filt_hat.astype(np.float32)


def compute_idx_info(xi, K, xi2delta, ndiag, tol):
    """Exact transcription of PhaseHarmonicCov.compute_idx_info
    (k_type='linear', multi_same=True)."""
    n_lambda = len(xi)
    k = np.arange(K)
    xi = np.array(xi)
    kxi = k[:, None] * xi[None, :]
    delta = np.maximum(k, 1)[:, None] * xi[None, :] * xi2delta
    delta[:, -1] = delta[:, -2]
    center_freq_dist = np.abs(kxi[:, None, :, None] - kxi[None, :, None, :])
    energy_width = delta[:, None, :, None] + delta[None, :, None, :]
    non_aliasing = center_freq_dist + energy_width <= 1.0
    has_energy = center_freq_dist <= energy_width * tol
    freq_sup = xi[None, None, :, None] - xi[None, None, None, :] > 0
    freq_eq = xi[None, None, :, None] - xi[None, None, None, :] == 0
    freq_eq = np.logical_and(
        freq_eq, k[:, None, None, None] - k[None, :, None, None] <= 0)
    triang_sup = np.logical_or(freq_eq, freq_sup)
    j = np.arange(n_lambda)
    keep_diag = np.abs(j[None, None, :, None] - j[None, None, None, :]) < ndiag
    do_keep = non_aliasing & has_energy & triang_sup & keep_diag
    keep_idx = np.argwhere(do_keep)
    return keep_idx[:, 2:], keep_idx[:, :2]   # xi_idx, k_idx


# -------------------------- static configuration -------------------------------
_XI, _FILT_HAT = build_filters()
_XI_IDX, _K_IDX = compute_idx_info(_XI, K, XI2DELTA, NDIAG, TOL)
_IDX = NF * _K_IDX + _XI_IDX          # flat indices into K*NF, k-major (module)
P = int(_IDX.shape[0])
assert P > 0
P_PAD = max(8, -(-P // 8) * 8)        # pad pair count to a sublane multiple
OUT_ROWS = NF_PAD + 2 * P_PAD         # [fst | cov_re | cov_im] row blocks


# ------------------------- compile-time constant arrays -------------------------
def build_constants():
    t = np.arange(T)
    dft = np.exp(-2j * np.pi * np.outer(t, t) / T)          # FFT matrix (symmetric)
    idft = np.exp(2j * np.pi * np.outer(t, t) / T) / T      # normalized inverse
    eye_b = np.eye(B)
    bd_dft = np.kron(eye_b, dft)                            # (BT, BT) block-diag
    bd_idft = np.kron(eye_b, idft)

    # real filter values broadcast over the (batch, time) lane axis
    h_lane = np.zeros((NF_PAD, BT), np.float32)
    h_lane[:NF] = np.tile(_FILT_HAT, (1, B))

    # stacked one-hot selection [sel0; sel1] over padded rows (k*NF_PAD + lambda)
    pad_idx = (_IDX // NF) * NF_PAD + (_IDX % NF)
    sel = np.zeros((2 * P_PAD, KR_PAD), np.float32)
    sel[np.arange(P), pad_idx[:, 0]] = 1.0
    sel[P_PAD + np.arange(P), pad_idx[:, 1]] = 1.0

    # per-batch time-mean reduction matrix, padded to a full 128-lane slab so the
    # single output store is unmasked / lane-dense
    mred = np.zeros((BT, LANE), np.float32)
    for b in range(B):
        mred[b * T:(b + 1) * T, b] = 1.0 / T

    return (bd_dft.real.astype(np.float32), bd_dft.imag.astype(np.float32),
            bd_idft.real.astype(np.float32), bd_idft.imag.astype(np.float32),
            h_lane, sel, mred)


# -------------------------------- Pallas kernel --------------------------------
def phc_kernel(xr_ref, xi_ref, dft_re_ref, dft_im_ref, idft_re_ref, idft_im_ref,
               h_ref, fstb_re_ref, fstb_im_ref, sel_ref, mred_ref, out_ref):
    def mm(a, b):
        return jnp.dot(a, b, preferred_element_type=jnp.float32)

    xr = xr_ref[...]                      # (NF_PAD, BT) signal re (rows replicated)
    xim = xi_ref[...]                     # (NF_PAD, BT) signal im (rows replicated)

    # fused FFT -> filter -> normalized iFFT (block-diagonal per batch lane block)
    dft_re = dft_re_ref[...]
    dft_im = dft_im_ref[...]
    xhat_re = mm(xr, dft_re) - mm(xim, dft_im)
    xhat_im = mm(xr, dft_im) + mm(xim, dft_re)
    h = h_ref[...]                        # real Fourier filters per row
    xfh_re = h * xhat_re
    xfh_im = h * xhat_im
    idft_re = idft_re_ref[...]
    idft_im = idft_im_ref[...]
    xf_re = mm(xfh_re, idft_re) - mm(xfh_im, idft_im)    # (NF_PAD, BT)
    xf_im = mm(xfh_re, idft_im) + mm(xfh_im, idft_re)

    # phase harmonics [z]^k = |z| exp(i k arg z), k = 0..K-1 (k-major 8-row blocks)
    rmag = jnp.sqrt(xf_re * xf_re + xf_im * xf_im)
    inv = pl.reciprocal(rmag + EPS, approx=True)         # EUP slot, not VALU
    ur = xf_re * inv
    ui = xf_im * inv
    exps_re = [rmag]
    exps_im = [jnp.zeros_like(rmag)]
    er, ei = xf_re, xf_im
    for kk in range(1, K):
        exps_re.append(er)
        exps_im.append(ei)
        if kk + 1 < K:
            er, ei = er * ur - ei * ui, er * ui + ei * ur
    e_re = jnp.concatenate(exps_re, axis=0)              # (KR_PAD, BT) tile-aligned
    e_im = jnp.concatenate(exps_im, axis=0)

    # subtract supplied first-order moment (pre-broadcast, lane-dense)
    off_re = e_re - fstb_re_ref[...]
    off_im = e_im - fstb_im_ref[...]

    # pair gather: stacked one-hot [sel0; sel1] -> two matmuls instead of four
    sel = sel_ref[...]
    y_re = mm(sel, off_re)                               # (2*P_PAD, BT)
    y_im = mm(sel, off_im)
    x0r, x1r = y_re[:P_PAD], y_re[P_PAD:]
    x0i, x1i = y_im[:P_PAD], y_im[P_PAD:]

    # covariance integrand x0 * conj(x1)
    cp_re = x0r * x1r + x0i * x1i
    cp_im = x0i * x1r - x0r * x1i

    # per-batch time means via ONE MXU matmul; single lane-dense output slab:
    #   rows [0, NF_PAD)              -> mean_t |z| per filter (first order, k=0)
    #   rows [NF_PAD, NF_PAD+P_PAD)   -> Re cov per pair
    #   rows [NF_PAD+P_PAD, OUT_ROWS) -> Im cov per pair
    red_in = jnp.concatenate([rmag, cp_re, cp_im], axis=0)   # (OUT_ROWS, BT)
    out_ref[...] = mm(red_in, mred_ref[...])                 # (OUT_ROWS, 128)


def phase_harmonic_cov_call(xrep_re, xrep_im, fstb_re, fstb_im, consts):
    dft_re, dft_im, idft_re, idft_im, h_lane, sel, mred = consts

    def full(shape):
        return pl.BlockSpec(shape, lambda i: (0, 0))

    return pl.pallas_call(
        phc_kernel,
        out_shape=jax.ShapeDtypeStruct((OUT_ROWS, LANE), jnp.float32),
        grid_spec=pltpu.PrefetchScalarGridSpec(
            num_scalar_prefetch=0,
            grid=(1,),                                   # batch collapsed onto lanes
            in_specs=[
                full((NF_PAD, BT)), full((NF_PAD, BT)),
                full((BT, BT)), full((BT, BT)),
                full((BT, BT)), full((BT, BT)),
                full((NF_PAD, BT)),
                full((KR_PAD, BT)), full((KR_PAD, BT)),
                full((2 * P_PAD, KR_PAD)),
                full((BT, LANE)),
            ],
            out_specs=full((OUT_ROWS, LANE)),
        ),
        compiler_params=pltpu.CompilerParams(dimension_semantics=("arbitrary",)),
    )(xrep_re, xrep_im, dft_re, dft_im, idft_re, idft_im, h_lane,
      fstb_re, fstb_im, sel, mred)


# ------------------------------ forward wrapper --------------------------------
def forward(x, fst_order, consts):
    """x: (B, C, T, 2); fst_order: (B, K, NF, C, 1, 2).
    Returns (fst (B, NF, 2), scd (B, P, 2)) like PhaseHarmonicCov.forward."""
    xsig = x[:, 0, :, :]                                   # (B, T, 2), C == 1
    xflat_re = xsig[..., 0].reshape(BT)                    # lanes = (batch, time)
    xflat_im = xsig[..., 1].reshape(BT)
    xrep_re = jnp.broadcast_to(xflat_re[None, :], (NF_PAD, BT))
    xrep_im = jnp.broadcast_to(xflat_im[None, :], (NF_PAD, BT))

    # first-order moment: pad NF -> NF_PAD, k-major rows, broadcast over time
    f0 = fst_order[:, :, :, 0, 0, :]                       # (B, K, NF, 2)
    f0 = jnp.pad(f0, ((0, 0), (0, 0), (0, NF_PAD - NF), (0, 0)))
    f0 = jnp.transpose(f0, (1, 2, 0, 3)).reshape(KR_PAD, B, 2)
    f0 = jnp.repeat(f0, T, axis=1)                         # (KR_PAD, BT, 2)
    fstb_re = f0[..., 0]
    fstb_im = f0[..., 1]

    out = phase_harmonic_cov_call(xrep_re, xrep_im, fstb_re, fstb_im, consts)

    # unpack the lane-dense slab back to the module's output layout
    fst_re = out[:NF, :B].T                                # (B, NF)
    fst = jnp.stack([fst_re, jnp.zeros_like(fst_re)], axis=-1)
    scd_re = out[NF_PAD:NF_PAD + P, :B].T                  # (B, P)
    scd_im = out[NF_PAD + P_PAD:NF_PAD + P_PAD + P, :B].T
    scd = jnp.stack([scd_re, scd_im], axis=-1)
    return fst, scd


# ------------------------ pure-JAX reference (module math) ----------------------
def reference_forward(x, fst_order):
    filt = jnp.asarray(_FILT_HAT, dtype=jnp.complex64)     # (NF, T)
    xc = (x[..., 0] + 1j * x[..., 1]).astype(jnp.complex64)  # (B, C, T)
    x_hat = jnp.fft.fft(xc, axis=-1)
    x_filt = jnp.fft.ifft(x_hat[:, None, :, :] * filt[None, :, None, :], axis=-1)
    re = jnp.real(x_filt).astype(jnp.float32)[:, :, 0, :]  # (B, NF, T)
    im = jnp.imag(x_filt).astype(jnp.float32)[:, :, 0, :]
    r = jnp.sqrt(re * re + im * im)
    inv = 1.0 / (r + EPS)
    ur, ui = re * inv, im * inv
    exps_re = [r]
    exps_im = [jnp.zeros_like(r)]
    er, ei = re, im
    for kk in range(1, K):
        exps_re.append(er)
        exps_im.append(ei)
        if kk + 1 < K:
            er, ei = er * ur - ei * ui, er * ui + ei * ur
    e_re = jnp.stack(exps_re, axis=1)                      # (B, K, NF, T)
    e_im = jnp.stack(exps_im, axis=1)
    fst = jnp.stack([jnp.mean(e_re[:, 0], axis=-1),
                     jnp.zeros((B, NF), jnp.float32)], axis=-1)
    f0 = fst_order[:, :, :, 0, 0, :]                       # (B, K, NF, 2)
    off_re = (e_re - f0[..., 0:1]).reshape(B, K * NF, T)
    off_im = (e_im - f0[..., 1:2]).reshape(B, K * NF, T)
    idx0 = jnp.asarray(_IDX[:, 0])
    idx1 = jnp.asarray(_IDX[:, 1])
    x0r, x0i = off_re[:, idx0], off_im[:, idx0]
    x1r, x1i = off_re[:, idx1], off_im[:, idx1]
    cov_re = jnp.mean(x0r * x1r + x0i * x1i, axis=-1)
    cov_im = jnp.mean(x0i * x1r - x0r * x1i, axis=-1)
    scd = jnp.stack([cov_re, cov_im], axis=-1)
    return fst, scd


# ------------------------------------ main -------------------------------------
if __name__ == "__main__":
    consts = tuple(jnp.asarray(c) for c in build_constants())

    key = jax.random.PRNGKey(0)
    k1, k2 = jax.random.split(key)
    x = jax.random.normal(k1, (B, C, T, 2), dtype=jnp.float32)
    fst_order = 0.1 * jax.random.normal(k2, (B, K, NF, C, 1, 2), dtype=jnp.float32)
    fst_order = fst_order.at[:, 1:].set(0.0)               # zero_fst convention

    fwd = jax.jit(lambda a, b: forward(a, b, consts))
    fst_out, scd_out = fwd(x, fst_order)
    jax.block_until_ready((fst_out, scd_out))

    # sanity check vs. pure-JAX reference of the full forward (fft path included);
    # tolerance leaves room for the EUP approx reciprocal (~1e-3 on the phasor).
    ref_fst, ref_scd = reference_forward(x, fst_order)
    np.testing.assert_allclose(np.asarray(fst_out), np.asarray(ref_fst),
                               rtol=1e-2, atol=5e-3)
    np.testing.assert_allclose(np.asarray(scd_out), np.asarray(ref_scd),
                               rtol=1e-2, atol=5e-3)
    print("KERNEL_OK")
</pallas_src>

<mosaic_0001>
module attributes {stable_mosaic.version = 11 : i64} {
  func.func @phc_kernel(%arg0: i32, %arg1: memref<8x64xf32, #tpu.memory_space<vmem>>, %arg2: memref<8x64xf32, #tpu.memory_space<vmem>>, %arg3: memref<64x64xf32, #tpu.memory_space<vmem>>, %arg4: memref<64x64xf32, #tpu.memory_space<vmem>>, %arg5: memref<64x64xf32, #tpu.memory_space<vmem>>, %arg6: memref<64x64xf32, #tpu.memory_space<vmem>>, %arg7: memref<8x64xf32, #tpu.memory_space<vmem>>, %arg8: memref<24x64xf32, #tpu.memory_space<vmem>>, %arg9: memref<24x64xf32, #tpu.memory_space<vmem>>, %arg10: memref<128x24xf32, #tpu.memory_space<vmem>>, %arg11: memref<64x128xf32, #tpu.memory_space<vmem>>, %arg12: memref<136x128xf32, #tpu.memory_space<vmem>>) attributes {dimension_semantics = [#tpu.dimension_semantics<arbitrary>], iteration_bounds = array<i64: 1>, scalar_prefetch = 0 : i64, scratch_operands = 0 : i64, tpu.core_type = #tpu.core_type<tc>, window_params = [{pipeline_mode = #tpu.pipeline_mode<synchronous>, transform_indices = @transform_0, window_bounds = array<i64: 8, 64>}, {pipeline_mode = #tpu.pipeline_mode<synchronous>, transform_indices = @transform_1, window_bounds = array<i64: 8, 64>}, {pipeline_mode = #tpu.pipeline_mode<synchronous>, transform_indices = @transform_2, window_bounds = array<i64: 64, 64>}, {pipeline_mode = #tpu.pipeline_mode<synchronous>, transform_indices = @transform_3, window_bounds = array<i64: 64, 64>}, {pipeline_mode = #tpu.pipeline_mode<synchronous>, transform_indices = @transform_4, window_bounds = array<i64: 64, 64>}, {pipeline_mode = #tpu.pipeline_mode<synchronous>, transform_indices = @transform_5, window_bounds = array<i64: 64, 64>}, {pipeline_mode = #tpu.pipeline_mode<synchronous>, transform_indices = @transform_6, window_bounds = array<i64: 8, 64>}, {pipeline_mode = #tpu.pipeline_mode<synchronous>, transform_indices = @transform_7, window_bounds = array<i64: 24, 64>}, {pipeline_mode = #tpu.pipeline_mode<synchronous>, transform_indices = @transform_8, window_bounds = array<i64: 24, 64>}, {pipeline_mode = #tpu.pipeline_mode<synchronous>, transform_indices = @transform_9, window_bounds = array<i64: 128, 24>}, {pipeline_mode = #tpu.pipeline_mode<synchronous>, transform_indices = @transform_10, window_bounds = array<i64: 64, 128>}, {pipeline_mode = #tpu.pipeline_mode<synchronous>, transform_indices = @transform_11, window_bounds = array<i64: 136, 128>}]} {
    %c0 = arith.constant 0 : index
    %c0_0 = arith.constant 0 : index
    %0 = vector.load %arg1[%c0, %c0_0] : memref<8x64xf32, #tpu.memory_space<vmem>>, vector<8x64xf32>
    %c0_1 = arith.constant 0 : index
    %c0_2 = arith.constant 0 : index
    %1 = vector.load %arg2[%c0_1, %c0_2] : memref<8x64xf32, #tpu.memory_space<vmem>>, vector<8x64xf32>
    %c0_3 = arith.constant 0 : index
    %c0_4 = arith.constant 0 : index
    %2 = vector.load %arg3[%c0_3, %c0_4] : memref<64x64xf32, #tpu.memory_space<vmem>>, vector<64x64xf32>
    %c0_5 = arith.constant 0 : index
    %c0_6 = arith.constant 0 : index
    %3 = vector.load %arg4[%c0_5, %c0_6] : memref<64x64xf32, #tpu.memory_space<vmem>>, vector<64x64xf32>
    %cst = arith.constant dense<0.000000e+00> : vector<8x64xf32>
    %4 = tpu.matmul %0, %2, %cst {dimension_numbers = #tpu.dot_dimension_numbers<[1], [0], [0], [1], [0, 0, 1, 1], [], []>} : vector<8x64xf32>, vector<64x64xf32>, vector<8x64xf32> -> vector<8x64xf32>
    %cst_7 = arith.constant dense<0.000000e+00> : vector<8x64xf32>
    %5 = tpu.matmul %1, %3, %cst_7 {dimension_numbers = #tpu.dot_dimension_numbers<[1], [0], [0], [1], [0, 0, 1, 1], [], []>} : vector<8x64xf32>, vector<64x64xf32>, vector<8x64xf32> -> vector<8x64xf32>
    %6 = arith.subf %4, %5 : vector<8x64xf32>
    %cst_8 = arith.constant dense<0.000000e+00> : vector<8x64xf32>
    %7 = tpu.matmul %0, %3, %cst_8 {dimension_numbers = #tpu.dot_dimension_numbers<[1], [0], [0], [1], [0, 0, 1, 1], [], []>} : vector<8x64xf32>, vector<64x64xf32>, vector<8x64xf32> -> vector<8x64xf32>
    %cst_9 = arith.constant dense<0.000000e+00> : vector<8x64xf32>
    %8 = tpu.matmul %1, %2, %cst_9 {dimension_numbers = #tpu.dot_dimension_numbers<[1], [0], [0], [1], [0, 0, 1, 1], [], []>} : vector<8x64xf32>, vector<64x64xf32>, vector<8x64xf32> -> vector<8x64xf32>
    %9 = arith.addf %7, %8 : vector<8x64xf32>
    %c0_10 = arith.constant 0 : index
    %c0_11 = arith.constant 0 : index
    %10 = vector.load %arg7[%c0_10, %c0_11] : memref<8x64xf32, #tpu.memory_space<vmem>>, vector<8x64xf32>
    %11 = arith.mulf %10, %6 : vector<8x64xf32>
    %12 = arith.mulf %10, %9 : vector<8x64xf32>
    %c0_12 = arith.constant 0 : index
    %c0_13 = arith.constant 0 : index
    %13 = vector.load %arg5[%c0_12, %c0_13] : memref<64x64xf32, #tpu.memory_space<vmem>>, vector<64x64xf32>
    %c0_14 = arith.constant 0 : index
    %c0_15 = arith.constant 0 : index
    %14 = vector.load %arg6[%c0_14, %c0_15] : memref<64x64xf32, #tpu.memory_space<vmem>>, vector<64x64xf32>
    %cst_16 = arith.constant dense<0.000000e+00> : vector<8x64xf32>
    %15 = tpu.matmul %11, %13, %cst_16 {dimension_numbers = #tpu.dot_dimension_numbers<[1], [0], [0], [1], [0, 0, 1, 1], [], []>} : vector<8x64xf32>, vector<64x64xf32>, vector<8x64xf32> -> vector<8x64xf32>
    %cst_17 = arith.constant dense<0.000000e+00> : vector<8x64xf32>
    %16 = tpu.matmul %12, %14, %cst_17 {dimension_numbers = #tpu.dot_dimension_numbers<[1], [0], [0], [1], [0, 0, 1, 1], [], []>} : vector<8x64xf32>, vector<64x64xf32>, vector<8x64xf32> -> vector<8x64xf32>
    %17 = arith.subf %15, %16 : vector<8x64xf32>
    %cst_18 = arith.constant dense<0.000000e+00> : vector<8x64xf32>
    %18 = tpu.matmul %11, %14, %cst_18 {dimension_numbers = #tpu.dot_dimension_numbers<[1], [0], [0], [1], [0, 0, 1, 1], [], []>} : vector<8x64xf32>, vector<64x64xf32>, vector<8x64xf32> -> vector<8x64xf32>
    %cst_19 = arith.constant dense<0.000000e+00> : vector<8x64xf32>
    %19 = tpu.matmul %12, %13, %cst_19 {dimension_numbers = #tpu.dot_dimension_numbers<[1], [0], [0], [1], [0, 0, 1, 1], [], []>} : vector<8x64xf32>, vector<64x64xf32>, vector<8x64xf32> -> vector<8x64xf32>
    %20 = arith.addf %18, %19 : vector<8x64xf32>
    %21 = arith.mulf %17, %17 : vector<8x64xf32>
    %22 = arith.mulf %20, %20 : vector<8x64xf32>
    %23 = arith.addf %21, %22 : vector<8x64xf32>
    %24 = math.sqrt %23 : vector<8x64xf32>
    %cst_20 = arith.constant 9.99999996E-13 : f32
    %25 = vector.broadcast %cst_20 : f32 to vector<8x64xf32>
    %26 = arith.addf %24, %25 : vector<8x64xf32>
    %27 = tpu.reciprocal %26 {approx = true} : vector<8x64xf32> -> vector<8x64xf32>
    %28 = arith.mulf %17, %27 : vector<8x64xf32>
    %29 = arith.mulf %20, %27 : vector<8x64xf32>
    %cst_21 = arith.constant 0.000000e+00 : f32
    %30 = vector.broadcast %cst_21 : f32 to vector<8x64xf32>
    %31 = arith.mulf %17, %28 : vector<8x64xf32>
    %32 = arith.mulf %20, %29 : vector<8x64xf32>
    %33 = arith.subf %31, %32 : vector<8x64xf32>
    %34 = arith.mulf %17, %29 : vector<8x64xf32>
    %35 = arith.mulf %20, %28 : vector<8x64xf32>
    %36 = arith.addf %34, %35 : vector<8x64xf32>
    %37 = tpu.concatenate %24, %17, %33 in 0 : vector<8x64xf32>, vector<8x64xf32>, vector<8x64xf32> -> vector<24x64xf32>
    %38 = tpu.concatenate %30, %20, %36 in 0 : vector<8x64xf32>, vector<8x64xf32>, vector<8x64xf32> -> vector<24x64xf32>
    %c0_22 = arith.constant 0 : index
    %c0_23 = arith.constant 0 : index
    %39 = vector.load %arg8[%c0_22, %c0_23] : memref<24x64xf32, #tpu.memory_space<vmem>>, vector<24x64xf32>
    %40 = arith.subf %37, %39 : vector<24x64xf32>
    %c0_24 = arith.constant 0 : index
    %c0_25 = arith.constant 0 : index
    %41 = vector.load %arg9[%c0_24, %c0_25] : memref<24x64xf32, #tpu.memory_space<vmem>>, vector<24x64xf32>
    %42 = arith.subf %38, %41 : vector<24x64xf32>
    %c0_26 = arith.constant 0 : index
    %c0_27 = arith.constant 0 : index
    %43 = vector.load %arg10[%c0_26, %c0_27] : memref<128x24xf32, #tpu.memory_space<vmem>>, vector<128x24xf32>
    %cst_28 = arith.constant dense<0.000000e+00> : vector<128x64xf32>
    %44 = tpu.matmul %43, %40, %cst_28 {dimension_numbers = #tpu.dot_dimension_numbers<[1], [0], [0], [1], [0, 0, 1, 1], [], []>} : vector<128x24xf32>, vector<24x64xf32>, vector<128x64xf32> -> vector<128x64xf32>
    %cst_29 = arith.constant dense<0.000000e+00> : vector<128x64xf32>
    %45 = tpu.matmul %43, %42, %cst_29 {dimension_numbers = #tpu.dot_dimension_numbers<[1], [0], [0], [1], [0, 0, 1, 1], [], []>} : vector<128x24xf32>, vector<24x64xf32>, vector<128x64xf32> -> vector<128x64xf32>
    %46 = vector.extract_strided_slice %44 {offsets = [0, 0], sizes = [64, 64], strides = [1, 1]} : vector<128x64xf32> to vector<64x64xf32>
    %47 = vector.extract_strided_slice %44 {offsets = [64, 0], sizes = [64, 64], strides = [1, 1]} : vector<128x64xf32> to vector<64x64xf32>
    %48 = vector.extract_strided_slice %45 {offsets = [0, 0], sizes = [64, 64], strides = [1, 1]} : vector<128x64xf32> to vector<64x64xf32>
    %49 = vector.extract_strided_slice %45 {offsets = [64, 0], sizes = [64, 64], strides = [1, 1]} : vector<128x64xf32> to vector<64x64xf32>
    %50 = arith.mulf %46, %47 : vector<64x64xf32>
    %51 = arith.mulf %48, %49 : vector<64x64xf32>
    %52 = arith.addf %50, %51 : vector<64x64xf32>
    %53 = arith.mulf %48, %47 : vector<64x64xf32>
    %54 = arith.mulf %46, %49 : vector<64x64xf32>
    %55 = arith.subf %53, %54 : vector<64x64xf32>
    %56 = tpu.concatenate %24, %52, %55 in 0 : vector<8x64xf32>, vector<64x64xf32>, vector<64x64xf32> -> vector<136x64xf32>
    %c0_30 = arith.constant 0 : index
    %c0_31 = arith.constant 0 : index
    %57 = vector.load %arg11[%c0_30, %c0_31] : memref<64x128xf32, #tpu.memory_space<vmem>>, vector<64x128xf32>
    %cst_32 = arith.constant dense<0.000000e+00> : vector<136x128xf32>
    %58 = tpu.matmul %56, %57, %cst_32 {dimension_numbers = #tpu.dot_dimension_numbers<[1], [0], [0], [1], [0, 0, 1, 1], [], []>} : vector<136x64xf32>, vector<64x128xf32>, vector<136x128xf32> -> vector<136x128xf32>
    %c0_33 = arith.constant 0 : index
    %c0_34 = arith.constant 0 : index
    %59 = vector.load %arg12[%c0_33, %c0_34] : memref<136x128xf32, #tpu.memory_space<vmem>>, vector<136x128xf32>
    tpu.vector_store %arg12[%c0_33, %c0_34], %58 {strides = array<i32>} : memref<136x128xf32, #tpu.memory_space<vmem>>, vector<136x128xf32>,
    return
  }
  func.func @transform_0(%arg0: i32) -> (i32, i32) {
    %c0_i32 = arith.constant 0 : i32
    %c0_i32_0 = arith.constant 0 : i32
    %c0_i32_1 = arith.constant 0 : i32
    return %c0_i32, %c0_i32_0 : i32, i32
  }
  func.func @transform_1(%arg0: i32) -> (i32, i32) {
    %c0_i32 = arith.constant 0 : i32
    %c0_i32_0 = arith.constant 0 : i32
    %c0_i32_1 = arith.constant 0 : i32
    return %c0_i32, %c0_i32_0 : i32, i32
  }
  func.func @transform_2(%arg0: i32) -> (i32, i32) {
    %c0_i32 = arith.constant 0 : i32
    %c0_i32_0 = arith.constant 0 : i32
    %c0_i32_1 = arith.constant 0 : i32
    return %c0_i32, %c0_i32_0 : i32, i32
  }
  func.func @transform_3(%arg0: i32) -> (i32, i32) {
    %c0_i32 = arith.constant 0 : i32
    %c0_i32_0 = arith.constant 0 : i32
    %c0_i32_1 = arith.constant 0 : i32
    return %c0_i32, %c0_i32_0 : i32, i32
  }
  func.func @transform_4(%arg0: i32) -> (i32, i32) {
    %c0_i32 = arith.constant 0 : i32
    %c0_i32_0 = arith.constant 0 : i32
    %c0_i32_1 = arith.constant 0 : i32
    return %c0_i32, %c0_i32_0 : i32, i32
  }
  func.func @transform_5(%arg0: i32) -> (i32, i32) {
    %c0_i32 = arith.constant 0 : i32
    %c0_i32_0 = arith.constant 0 : i32
    %c0_i32_1 = arith.constant 0 : i32
    return %c0_i32, %c0_i32_0 : i32, i32
  }
  func.func @transform_6(%arg0: i32) -> (i32, i32) {
    %c0_i32 = arith.constant 0 : i32
    %c0_i32_0 = arith.constant 0 : i32
    %c0_i32_1 = arith.constant 0 : i32
    return %c0_i32, %c0_i32_0 : i32, i32
  }
  func.func @transform_7(%arg0: i32) -> (i32, i32) {
    %c0_i32 = arith.constant 0 : i32
    %c0_i32_0 = arith.constant 0 : i32
    %c0_i32_1 = arith.constant 0 : i32
    return %c0_i32, %c0_i32_0 : i32, i32
  }
  func.func @transform_8(%arg0: i32) -> (i32, i32) {
    %c0_i32 = arith.constant 0 : i32
    %c0_i32_0 = arith.constant 0 : i32
    %c0_i32_1 = arith.constant 0 : i32
    return %c0_i32, %c0_i32_0 : i32, i32
  }
  func.func @transform_9(%arg0: i32) -> (i32, i32) {
    %c0_i32 = arith.constant 0 : i32
    %c0_i32_0 = arith.constant 0 : i32
    %c0_i32_1 = arith.constant 0 : i32
    return %c0_i32, %c0_i32_0 : i32, i32
  }
  func.func @transform_10(%arg0: i32) -> (i32, i32) {
    %c0_i32 = arith.constant 0 : i32
    %c0_i32_0 = arith.constant 0 : i32
    %c0_i32_1 = arith.constant 0 : i32
    return %c0_i32, %c0_i32_0 : i32, i32
  }
  func.func @transform_11(%arg0: i32) -> (i32, i32) {
    %c0_i32 = arith.constant 0 : i32
    %c0_i32_0 = arith.constant 0 : i32
    %c0_i32_1 = arith.constant 0 : i32
    return %c0_i32, %c0_i32_0 : i32, i32
  }
}

</mosaic_0001>

<bundles_post_ra>
// kernel: _lambda_.1
= control target key start
LH: loop header
LB: loop body
LE: loop exit
PB: predicated region body
PF: predicated region fallthrough
CT: control target
= control target key end

     0   :  { %vm56_vm0 = vcmask 523264   ;;  %vm303_vm3 = vcmask 195584   ;;  %s1178_s2 = inlined_call_operand.vmem [shape: f32[64,64], index: 2, kind: input, shape index: {}]   ;;  %s1179_s3 = inlined_call_operand.vmem [shape: f32[64,64], index: 3, kind: input, shape index: {}]   ;;  %s1180_s1 = inlined_call_operand.vmem [shape: f32[8,64], index: 1, kind: input, shape index: {}]   ;;  %s1181_s0 = inlined_call_operand.vmem [shape: f32[8,64], index: 0, kind: input, shape index: {}]   ;;  %s1182_s4 = inlined_call_operand.vmem [shape: f32[64,64], index: 4, kind: input, shape index: {}]   ;;  %s1183_s5 = inlined_call_operand.vmem [shape: f32[64,64], index: 5, kind: input, shape index: {}]   ;;  %s1184_s6 = inlined_call_operand.vmem [shape: f32[8,64], index: 6, kind: input, shape index: {}]   ;;  %s1185_s10 = inlined_call_operand.vmem [shape: f32[64,128], index: 10, kind: input, shape index: {}]   ;;  %s1186_s7 = inlined_call_operand.vmem [shape: f32[24,64], index: 7, kind: input, shape index: {}]   ;;  %s1187_s8 = inlined_call_operand.vmem [shape: f32[24,64], index: 8, kind: input, shape index: {}]   ;;  %s1188_s9 = inlined_call_operand.vmem [shape: f32[128,24], index: 9, kind: input, shape index: {}]   ;;  %s1189_s11 = inlined_call_operand.vmem [shape: f32[136,128], index: 11, kind: output, shape index: {}]  }
   0x1   :  { %v47_v0 = vld [vmem:[%s1178_s2 + $0x38] sm:$0xff]  ;;  %v46_v2 = vld [vmem:[%s1178_s2 + $0x30] sm:$0xff]  ;;  %v45_v4 = vld [vmem:[%s1178_s2 + $0x28] sm:$0xff] }
   0x2   :  { %v55_v1 = vld [vmem:[%s1179_s3 + $0x38] sm:$0xff]  ;;  %112 = vmatpush.msra.mxu2 %v47_v0  ;;  %v54_v3 = vld [vmem:[%s1179_s3 + $0x30] sm:$0xff]  ;;  %v53_v5 = vld [vmem:[%s1179_s3 + $0x28] sm:$0xff]  ;;  %68 = vmatpush.msra.mxu0 %v47_v0 }
   0x3   :  { %132 = vmatpush.msra.mxu3 %v55_v1  ;;  %91 = vmatpush.msra.mxu1 %v55_v1  ;;  %v44_v6 = vld [vmem:[%s1178_s2 + $0x20] sm:$0xff]  ;;  %v43_v8 = vld [vmem:[%s1178_s2 + $0x18] sm:$0xff]  ;;  %v42_v10 = vld [vmem:[%s1178_s2 + $0x10] sm:$0xff] }
   0x4   :  { %113 = vmatpush.msra.mxu2 %v46_v2  ;;  %v52_v7 = vld [vmem:[%s1179_s3 + $0x20] sm:$0xff]  ;;  %69 = vmatpush.msra.mxu0 %v46_v2  ;;  %v51_v9 = vld [vmem:[%s1179_s3 + $0x18] sm:$0xff]  ;;  %v50_v11 = vld [vmem:[%s1179_s3 + $0x10] sm:$0xff] }
   0x5   :  { %133 = vmatpush.msra.mxu3 %v54_v3  ;;  %92 = vmatpush.msra.mxu1 %v54_v3  ;;  %v41_v12 = vld [vmem:[%s1178_s2 + $0x8] sm:$0xff]  ;;  %v40_v14 = vld [vmem:[%s1178_s2] sm:$0xff]  ;;  %v154_v18 = vld [vmem:[%s1182_s4 + $0x38] sm:$0xff] }
   0x6   :  { %114 = vmatpush.msra.mxu2 %v45_v4  ;;  %70 = vmatpush.msra.mxu0 %v45_v4  ;;  %v49_v13 = vld [vmem:[%s1179_s3 + $0x8] sm:$0xff]  ;;  %v48_v15 = vld [vmem:[%s1179_s3] sm:$0xff]  ;;  %v162_v19 = vld [vmem:[%s1183_s5 + $0x38] sm:$0xff] }
   0x7   :  { %134 = vmatpush.msra.mxu3 %v53_v5  ;;  %93 = vmatpush.msra.mxu1 %v53_v5  ;;  %v39_v16 = vld [vmem:[%s1180_s1] sm:$0xff]  ;;  %v153_v20 = vld [vmem:[%s1182_s4 + $0x30] sm:$0xff]  ;;  %v152_v22 = vld [vmem:[%s1182_s4 + $0x28] sm:$0xff] }
   0x8   :  { %115 = vmatpush.msra.mxu2 %v44_v6  ;;  %71 = vmatpush.msra.mxu0 %v44_v6  ;;  %v38_v17 = vld [vmem:[%s1181_s0] sm:$0xff]  ;;  %v161_v21 = vld [vmem:[%s1183_s5 + $0x30] sm:$0xff]  ;;  %v160_v23 = vld [vmem:[%s1183_s5 + $0x28] sm:$0xff] }
   0x9   :  { %135 = vmatpush.msra.mxu3 %v52_v7  ;;  %94 = vmatpush.msra.mxu1 %v52_v7  ;;  %v151_v24 = vld [vmem:[%s1182_s4 + $0x20] sm:$0xff]  ;;  %v150_v26 = vld [vmem:[%s1182_s4 + $0x18] sm:$0xff]  ;;  %v149_v28 = vld [vmem:[%s1182_s4 + $0x10] sm:$0xff] }
   0xa   :  { %116 = vmatpush.msra.mxu2 %v43_v8  ;;  %72 = vmatpush.msra.mxu0 %v43_v8  ;;  %v159_v25 = vld [vmem:[%s1183_s5 + $0x20] sm:$0xff]  ;;  %v158_v27 = vld [vmem:[%s1183_s5 + $0x18] sm:$0xff]  ;;  %v157_v29 = vld [vmem:[%s1183_s5 + $0x10] sm:$0xff] }
   0xb   :  { %136 = vmatpush.msra.mxu3 %v51_v9  ;;  %95 = vmatpush.msra.mxu1 %v51_v9  ;;  %v148_v30 = vld [vmem:[%s1182_s4 + $0x8] sm:$0xff]  ;;  %v147_v32 = vld [vmem:[%s1182_s4] sm:$0xff]  ;;  %v929_v43 = vld [vmem:[%s1185_s10 + $0x38] sm:$0xff] }
   0xc   :  { %117 = vmatpush.msra.mxu2 %v42_v10  ;;  %73 = vmatpush.msra.mxu0 %v42_v10  ;;  %v156_v31 = vld [vmem:[%s1183_s5 + $0x8] sm:$0xff]  ;;  %v155_v33 = vld [vmem:[%s1183_s5] sm:$0xff]  ;;  %v934_v44 = vld [vmem:[%s1185_s10 + $0x30] sm:$0xff] }
   0xd   :  { %137 = vmatpush.msra.mxu3 %v50_v11  ;;  %96 = vmatpush.msra.mxu1 %v50_v11  ;;  %v144_v36 = vld [vmem:[%s1184_s6] sm:$0xff]  ;;  %v940_v45 = vld [vmem:[%s1185_s10 + $0x28] sm:$0xff]  ;;  %v952_v47 = vld [vmem:[%s1185_s10 + $0x18] sm:$0xff] }
   0xe   :  { %118 = vmatpush.msra.mxu2 %v41_v12  ;;  %74 = vmatpush.msra.mxu0 %v41_v12  ;;  %v946_v46 = vld [vmem:[%s1185_s10 + $0x20] sm:$0xff]  ;;  %v958_v48 = vld [vmem:[%s1185_s10 + $0x10] sm:$0xff]  ;;  %v964_v49 = vld [vmem:[%s1185_s10 + $0x8] sm:$0xff] }
   0xf   :  { %138 = vmatpush.msra.mxu3 %v49_v13  ;;  %97 = vmatpush.msra.mxu1 %v49_v13  ;;  %v970_v50 = vld [vmem:[%s1185_s10] sm:$0xff] }
  0x10   :  { %119 = vmatpush.msra.mxu2 %v40_v14  ;;  %75 = vmatpush.msra.mxu0 %v40_v14  ;;  %v277_v14 = vld [vmem:[%s1186_s7 + $0x10] sm:$0xff] }
  0x11   :  { %139 = vmatpush.msra.mxu3 %v48_v15  ;;  %680 = vmatmul.msk.f32.vlgmr.msra.gmra.mxu2 %vm56_vm0, %v39_v16 }
  0x12   :  { %681 = vmatmul.msk.f32.vlgmr.msra.gmra.mxu3 %vm56_vm0, %v38_v17  ;;  %98 = vmatpush.msra.mxu1 %v48_v15  ;;  %v283_v15 = vld [vmem:[%s1187_s8 + $0x10] sm:$0xff] }
  0x13   :  { %678 = vmatmul.msk.f32.vlgmr.msra.gmra.mxu0 %vm56_vm0, %v38_v17  ;;  %679 = vmatmul.msk.f32.vlgmr.msra.gmra.mxu1 %vm56_vm0, %v39_v16 }
  0x14   :  { %174 = vmatpush.msrb.mxu0 %v154_v18  ;;  %197 = vmatpush.msrb.mxu1 %v162_v19 }
  0x15   :  { %218 = vmatpush.msrb.mxu2 %v154_v18  ;;  %238 = vmatpush.msrb.mxu3 %v162_v19  ;;  %v276_v18 = vld [vmem:[%s1186_s7 + $0x8] sm:$0xff] }
  0x16   :  { %175 = vmatpush.msrb.mxu0 %v153_v20  ;;  %198 = vmatpush.msrb.mxu1 %v161_v21 }
  0x17   :  { %219 = vmatpush.msrb.mxu2 %v153_v20  ;;  %239 = vmatpush.msrb.mxu3 %v161_v21  ;;  %v282_v21 = vld [vmem:[%s1187_s8 + $0x8] sm:$0xff] }
  0x18   :  { %176 = vmatpush.msrb.mxu0 %v152_v22  ;;  %199 = vmatpush.msrb.mxu1 %v160_v23 }
  0x19   :  { %220 = vmatpush.msrb.mxu2 %v152_v22  ;;  %240 = vmatpush.msrb.mxu3 %v160_v23  ;;  %v281_v22 = vld [vmem:[%s1187_s8] sm:$0xff] }
  0x1a   :  { %177 = vmatpush.msrb.mxu0 %v151_v24  ;;  %200 = vmatpush.msrb.mxu1 %v159_v25  ;;  %v275_v23 = vld [vmem:[%s1186_s7] sm:$0xff] }
  0x1b   :  { %221 = vmatpush.msrb.mxu2 %v151_v24  ;;  %241 = vmatpush.msrb.mxu3 %v159_v25 }
  0x1c   :  { %178 = vmatpush.msrb.mxu0 %v150_v26  ;;  %201 = vmatpush.msrb.mxu1 %v158_v27 }
  0x1d   :  { %222 = vmatpush.msrb.mxu2 %v150_v26  ;;  %242 = vmatpush.msrb.mxu3 %v158_v27  ;;  %v284_v26 = vsub.f32 0.0, %v281_v22 }
  0x1e   :  { %179 = vmatpush.msrb.mxu0 %v149_v28  ;;  %202 = vmatpush.msrb.mxu1 %v157_v29 }
  0x1f   :  { %223 = vmatpush.msrb.mxu2 %v149_v28  ;;  %243 = vmatpush.msrb.mxu3 %v157_v29  ;;  %v287_v28 = vld [vmem:[%s1188_s9] sm:$0xff]  ;;  %v300_v29 = vld [vmem:[%s1188_s9 + $0x68] sm:$0xff] }
  0x20   :  { %180 = vmatpush.msrb.mxu0 %v148_v30  ;;  %203 = vmatpush.msrb.mxu1 %v156_v31 }
  0x21   :  { %224 = vmatpush.msrb.mxu2 %v148_v30  ;;  %244 = vmatpush.msrb.mxu3 %v156_v31  ;;  %v288_v30 = vld [vmem:[%s1188_s9 + $0x8] sm:$0xff]  ;;  %v301_v31 = vld [vmem:[%s1188_s9 + $0x70] sm:$0xff] }
  0x22   :  { %181 = vmatpush.msrb.mxu0 %v147_v32  ;;  %204 = vmatpush.msrb.mxu1 %v155_v33 }
  0x23   :  { %225 = vmatpush.msrb.mxu2 %v147_v32  ;;  %245 = vmatpush.msrb.mxu3 %v155_v33  ;;  %v289_v32 = vld [vmem:[%s1188_s9 + $0x10] sm:$0xff]  ;;  %v302_v33 = vld [vmem:[%s1188_s9 + $0x78] sm:$0xff] }
  0x25   :  { %597 = vmatpush.msra.mxu2 %v929_v43 }
  0x27   :  { %598 = vmatpush.msra.mxu2 %v934_v44 }
  0x29   :  { %599 = vmatpush.msra.mxu2 %v940_v45 }
  0x2b   :  { %600 = vmatpush.msra.mxu2 %v946_v46 }
  0x2d   :  { %601 = vmatpush.msra.mxu2 %v952_v47 }
  0x2f   :  { %602 = vmatpush.msra.mxu2 %v958_v48 }
  0x31   :  { %603 = vmatpush.msra.mxu2 %v964_v49 }
  0x33   :  { %604 = vmatpush.msra.mxu2 %v970_v50 }
  0x90   :  { %v77_v34 = vpop.f32.mrf.mxu0  ;;  %v100_v35 = vpop.f32.mrf.mxu1 }
  0x91   :  { %v103_v37 = vsub.f32 %v77_v34, %v100_v35  ;;  %v290_v34 = vld [vmem:[%s1188_s9 + $0x18] sm:$0xff]  ;;  %v291_v35 = vld [vmem:[%s1188_s9 + $0x20] sm:$0xff] }
  0x93   :  { %v145_v38 = vmul.f32 %v144_v36, %v103_v37  ;;  %v293_v37 = vld [vmem:[%s1188_s9 + $0x30] sm:$0xff] }
  0x94   :  { %v121_v39 = vpop.f32.mrf.mxu2 }
  0x95   :  { %v141_v40 = vpop.f32.mrf.mxu3  ;;  %682 = vmatmul.msk.f32.vlgmr.msrb.gmra.mxu0 %vm56_vm0, %v145_v38  ;;  %685 = vmatmul.msk.f32.vlgmr.msrb.gmra.mxu3 %vm56_vm0, %v145_v38  ;;  %v294_v38 = vld [vmem:[%s1188_s9 + $0x38] sm:$0xff] }
  0x96   :  { %v142_v41 = vadd.f32 %v141_v40, %v121_v39  ;;  %v295_v39 = vld [vmem:[%s1188_s9 + $0x40] sm:$0xff]  ;;  %v296_v40 = vld [vmem:[%s1188_s9 + $0x48] sm:$0xff] }
  0x98   :  { %v146_v42 = vmul.f32 %v144_v36, %v142_v41  ;;  %v292_v36 = vld [vmem:[%s1188_s9 + $0x28] sm:$0xff]  ;;  %v297_v41 = vld [vmem:[%s1188_s9 + $0x50] sm:$0xff] }
  0x9a   :  { %683 = vmatmul.msk.f32.vlgmr.msrb.gmra.mxu1 %vm56_vm0, %v146_v42  ;;  %684 = vmatmul.msk.f32.vlgmr.msrb.gmra.mxu2 %vm56_vm0, %v146_v42  ;;  %v298_v42 = vld [vmem:[%s1188_s9 + $0x58] sm:$0xff] }
 0x112   :  { %v183_v51 = vpop.f32.mrf.mxu0 }
 0x117   :  { %v206_v52 = vpop.f32.mrf.mxu1 }
 0x118   :  { %v247_v53 = vpop.f32.mrf.mxu3  ;;  %v209_v54 = vsub.f32 %v183_v51, %v206_v52 }
 0x11a   :  { %v250_v57 = vmul.f32 %v209_v54, %v209_v54  ;;  %v279_v24 = vsub.f32 %v209_v54, %v276_v18 }
 0x11d   :  { %v227_v55 = vpop.f32.mrf.mxu2 }
 0x11e   :  { %v248_v56 = vadd.f32 %v247_v53, %v227_v55 }
 0x120   :  { %v251_v58 = vmul.f32 %v248_v56, %v248_v56  ;;  %v285_v25 = vsub.f32 %v248_v56, %v282_v21 }
 0x122   :  { %v252_v59 = vadd.f32 %v251_v58, %v250_v57 }
 0x124   :  { %749 = vrsqrt.f32 %v252_v59  ;;  %vm260_vm1 = vcmp.eq.f32.partialorder %v252_v59, inf  ;;  %v263_v3 = vand.u32 2147483648, %v252_v59  ;;  %vm262_vm2 = vcmp.eq.f32.partialorder %v252_v59, 0.0 }
 0x12a   :  { %v750_v60 = vpop.eup %749 }
 0x12b   :  { %v254_v61 = vmul.f32 %v750_v60, %v252_v59 }
 0x12d   :  { %v255_v62 = vmul.f32 %v750_v60, %v254_v61 }
 0x12f   :  { %v256_v63 = vmul.f32 0.5, %v255_v62 }
 0x131   :  { %v257_v0 = vsub.f32 1.5, %v256_v63 }
 0x133   :  { %v258_v1 = vmul.f32 %v750_v60, %v257_v0 }
 0x135   :  { %v259_v2 = vmul.f32 %v258_v1, %v252_v59 }
 0x137   :  { %v261_v4 = vsel %vm260_vm1, %v252_v59, %v259_v2 }
 0x138   :  { %v264_v5 = vsel %vm262_vm2, %v263_v3, %v261_v4 }
 0x139   :  { %v265_v6 = vadd.f32 1e-12, %v264_v5  ;;  %718 = vmatmul.msk.f32.vlgmr.msra.gmra.mxu2 %vm56_vm0, %v264_v5  ;;  %v278_v27 = vsub.f32 %v264_v5, %v275_v23 }
 0x13b   :  { %751 = vrcp.f32 %v265_v6 }
 0x141   :  { %v752_v7 = vpop.eup %751 }
 0x142   :  { %v267_v8 = vmul.f32 %v752_v7, %v209_v54  ;;  %v268_v9 = vmul.f32 %v752_v7, %v248_v56 }
 0x144   :  { %v269_v10 = vmul.f32 %v267_v8, %v209_v54  ;;  %v270_v11 = vmul.f32 %v268_v9, %v248_v56  ;;  %v272_v12 = vmul.f32 %v268_v9, %v209_v54  ;;  %v273_v13 = vmul.f32 %v267_v8, %v248_v56 }
 0x146   :  { %v271_v16 = vsub.f32 %v269_v10, %v270_v11  ;;  %v274_v17 = vadd.f32 %v273_v13, %v272_v12 }
 0x148   :  { %v280_v19 = vsub.f32 %v271_v16, %v277_v14  ;;  %v286_v20 = vsub.f32 %v274_v17, %v283_v15 }
 0x14a   :  { %365 = vmatpush.msra.mxu0 %v280_v19  ;;  %735 = vmatpush.msra.mxu3 %v280_v19 }
 0x14b   :  { %430 = vmatpush.msra.mxu1 %v286_v20 }
 0x14c   :  { %366 = vmatpush.msra.mxu0 %v279_v24  ;;  %736 = vmatpush.msra.mxu3 %v279_v24 }
 0x14d   :  { %431 = vmatpush.msra.mxu1 %v285_v25 }
 0x14e   :  { %367 = vmatpush.msra.mxu0 %v278_v27  ;;  %737 = vmatpush.msra.mxu3 %v278_v27 }
 0x14f   :  { %432 = vmatpush.msra.mxu1 %v284_v26  ;;  %686 = vmatmul.msk.f32.vlgmr.msra.gmra.mxu0 %vm303_vm3, %v287_v28 }
 0x150   :  { %738 = vmatpush.msrb.mxu3 %v286_v20  ;;  %702 = vmatmul.msk.f32.vlgmr.msra.gmra.mxu1 %vm303_vm3, %v287_v28 }
 0x151   :  { %699 = vmatmul.msk.f32.vlgmr.msra.gmra.mxu3 %vm303_vm3, %v300_v29 }
 0x152   :  { %739 = vmatpush.msrb.mxu3 %v285_v25 }
 0x154   :  { %740 = vmatpush.msrb.mxu3 %v284_v26 }
 0x156   :  { %741 = vmatpush.msra.mxu3 %v929_v43  ;;  %v299_v43 = vld [vmem:[%s1188_s9 + $0x60] sm:$0xff] }
 0x157   :  { %687 = vmatmul.msk.f32.gmra.mxu0 %vm303_vm3, %v288_v30 }
 0x158   :  { %742 = vmatpush.msra.mxu3 %v934_v44  ;;  %703 = vmatmul.msk.f32.gmra.mxu1 %vm303_vm3, %v288_v30 }
 0x159   :  { %700 = vmatmul.msk.f32.gmra.mxu3 %vm303_vm3, %v301_v31 }
 0x15a   :  { %743 = vmatpush.msra.mxu3 %v940_v45 }
 0x15c   :  { %744 = vmatpush.msra.mxu3 %v946_v46 }
 0x15e   :  { %745 = vmatpush.msra.mxu3 %v952_v47 }
 0x15f   :  { %688 = vmatmul.msk.f32.gmra.mxu0 %vm303_vm3, %v289_v32 }
 0x160   :  { %704 = vmatmul.msk.f32.gmra.mxu1 %vm303_vm3, %v289_v32  ;;  %746 = vmatpush.msra.mxu3 %v958_v48 }
 0x161   :  { %701 = vmatmul.msk.f32.gmra.mxu3 %vm303_vm3, %v302_v33 }
 0x162   :  { %747 = vmatpush.msra.mxu3 %v964_v49 }
 0x164   :  { %748 = vmatpush.msra.mxu3 %v970_v50 }
 0x167   :  { %689 = vmatmul.msk.f32.gmra.mxu0 %vm303_vm3, %v290_v34 }
 0x168   :  { %705 = vmatmul.msk.f32.gmra.mxu1 %vm303_vm3, %v290_v34 }
 0x169   :  { %715 = vmatmul.msk.f32.vlgmr.msrb.gmra.mxu3 %vm303_vm3, %v300_v29 }
 0x16f   :  { %690 = vmatmul.msk.f32.gmra.mxu0 %vm303_vm3, %v291_v35 }
 0x170   :  { %706 = vmatmul.msk.f32.gmra.mxu1 %vm303_vm3, %v291_v35 }
 0x171   :  { %716 = vmatmul.msk.f32.gmra.mxu3 %vm303_vm3, %v301_v31 }
 0x177   :  { %691 = vmatmul.msk.f32.gmra.mxu0 %vm303_vm3, %v292_v36 }
 0x178   :  { %707 = vmatmul.msk.f32.gmra.mxu1 %vm303_vm3, %v292_v36 }
 0x179   :  { %717 = vmatmul.msk.f32.gmra.mxu3 %vm303_vm3, %v302_v33 }
 0x17f   :  { %692 = vmatmul.msk.f32.gmra.mxu0 %vm303_vm3, %v293_v37 }
 0x180   :  { %708 = vmatmul.msk.f32.gmra.mxu1 %vm303_vm3, %v293_v37 }
 0x187   :  { %693 = vmatmul.msk.f32.gmra.mxu0 %vm303_vm3, %v294_v38 }
 0x188   :  { %709 = vmatmul.msk.f32.gmra.mxu1 %vm303_vm3, %v294_v38 }
 0x18f   :  { %694 = vmatmul.msk.f32.gmra.mxu0 %vm303_vm3, %v295_v39 }
 0x190   :  { %710 = vmatmul.msk.f32.gmra.mxu1 %vm303_vm3, %v295_v39 }
 0x197   :  { %695 = vmatmul.msk.f32.gmra.mxu0 %vm303_vm3, %v296_v40 }
 0x198   :  { %711 = vmatmul.msk.f32.gmra.mxu1 %vm303_vm3, %v296_v40 }
 0x19f   :  { %696 = vmatmul.msk.f32.gmra.mxu0 %vm303_vm3, %v297_v41 }
 0x1a0   :  { %712 = vmatmul.msk.f32.gmra.mxu1 %vm303_vm3, %v297_v41 }
 0x1a7   :  { %697 = vmatmul.msk.f32.gmra.mxu0 %vm303_vm3, %v298_v42 }
 0x1a8   :  { %713 = vmatmul.msk.f32.gmra.mxu1 %vm303_vm3, %v298_v42 }
 0x1af   :  { %698 = vmatmul.msk.f32.gmra.mxu0 %vm303_vm3, %v299_v43 }
 0x1b0   :  { %714 = vmatmul.msk.f32.gmra.mxu1 %vm303_vm3, %v299_v43 }
 0x1bc   :  { %v606_v44 = vpop.f32.mrf.mxu2 }
 0x1bd   :  { %657 = vst [vmem:[%s1189_s11] sm:$0xff] %v606_v44 }
 0x1cc   :  { %v369_v45 = vpop.f32.mrf.mxu0 }
 0x1cd   :  { %v434_v46 = vpop.f32.mrf.mxu1 }
 0x1d4   :  { %v372_v47 = vpop.f32.mrf.mxu0  ;;  %v408_v48 = vpop.f32.mrf.mxu3 }
 0x1d5   :  { %v437_v49 = vpop.f32.mrf.mxu1 }
 0x1dc   :  { %v375_v50 = vpop.f32.mrf.mxu0  ;;  %v411_v51 = vpop.f32.mrf.mxu3 }
 0x1dd   :  { %v440_v52 = vpop.f32.mrf.mxu1 }
 0x1e4   :  { %v1084_v53 = vpop.f32.mrf.mxu0  ;;  %v414_v54 = vpop.f32.mrf.mxu3 }
 0x1e5   :  { %v443_v55 = vpop.f32.mrf.mxu1 }
 0x1ec   :  { %v1086_v56 = vpop.f32.mrf.mxu0  ;;  %v473_v58 = vpop.f32.mrf.mxu3 }
 0x1ed   :  { %v1088_v57 = vpop.f32.mrf.mxu1 }
 0x1f4   :  { %v384_v59 = vpop.f32.mrf.mxu0  ;;  %v476_v3 = vpop.f32.mrf.mxu3 }
 0x1f5   :  { %v487_v60 = vmul.f32 %v408_v48, %v384_v59  ;;  %v449_v61 = vpop.f32.mrf.mxu1  ;;  %v1090_v62 = vmul.f32 %v473_v58, %v384_v59 }
 0x1f6   :  { %v1092_v63 = vmul.f32 %v449_v61, %v408_v48  ;;  %v495_v0 = vmul.f32 %v473_v58, %v449_v61 }
 0x1f8   :  { %v1094_v1 = vadd.f32 %v495_v0, %v487_v60  ;;  %v527_v2 = vsub.f32 %v1092_v63, %v1090_v62 }
 0x1fc   :  { %v387_v4 = vpop.f32.mrf.mxu0  ;;  %v479_v12 = vpop.f32.mrf.mxu3 }
 0x1fd   :  { %v488_v5 = vmul.f32 %v411_v51, %v387_v4  ;;  %v452_v6 = vpop.f32.mrf.mxu1  ;;  %v1098_v7 = vmul.f32 %v476_v3, %v387_v4 }
 0x1fe   :  { %v1100_v8 = vmul.f32 %v452_v6, %v411_v51  ;;  %v496_v9 = vmul.f32 %v476_v3, %v452_v6 }
 0x200   :  { %v504_v10 = vadd.f32 %v496_v9, %v488_v5  ;;  %v528_v11 = vsub.f32 %v1100_v8, %v1098_v7 }
 0x204   :  { %v390_v13 = vpop.f32.mrf.mxu0 }
 0x205   :  { %v489_v14 = vmul.f32 %v414_v54, %v390_v13  ;;  %v455_v15 = vpop.f32.mrf.mxu1  ;;  %v521_v16 = vmul.f32 %v479_v12, %v390_v13 }
 0x206   :  { %v513_v17 = vmul.f32 %v455_v15, %v414_v54  ;;  %v497_v18 = vmul.f32 %v479_v12, %v455_v15 }
 0x208   :  { %v505_v19 = vadd.f32 %v497_v18, %v489_v14  ;;  %v529_v20 = vsub.f32 %v513_v17, %v521_v16 }
 0x20c   :  { %v393_v21 = vpop.f32.mrf.mxu0 }
 0x20d   :  { %v482_v22 = vmul.f32 %v393_v21, %v369_v45  ;;  %v506_v23 = vmul.f32 %v434_v46, %v393_v21  ;;  %v458_v24 = vpop.f32.mrf.mxu1 }
 0x20e   :  { %v490_v25 = vmul.f32 %v458_v24, %v434_v46  ;;  %v514_v26 = vmul.f32 %v458_v24, %v369_v45 }
 0x210   :  { %v498_v27 = vadd.f32 %v490_v25, %v482_v22  ;;  %v522_v28 = vsub.f32 %v506_v23, %v514_v26 }
 0x212   :  { %719 = vmatmul.msk.f32.gmra.mxu2 %vm56_vm0, %v498_v27 }
 0x214   :  { %v396_v29 = vpop.f32.mrf.mxu0 }
 0x215   :  { %v483_v30 = vmul.f32 %v396_v29, %v372_v47  ;;  %v507_v31 = vmul.f32 %v437_v49, %v396_v29  ;;  %v461_v32 = vpop.f32.mrf.mxu1 }
 0x216   :  { %v491_v33 = vmul.f32 %v461_v32, %v437_v49  ;;  %v515_v34 = vmul.f32 %v461_v32, %v372_v47 }
 0x218   :  { %v499_v35 = vadd.f32 %v491_v33, %v483_v30  ;;  %v523_v36 = vsub.f32 %v507_v31, %v515_v34 }
 0x21a   :  { %720 = vmatmul.msk.f32.gmra.mxu2 %vm56_vm0, %v499_v35 }
 0x21c   :  { %v399_v37 = vpop.f32.mrf.mxu0 }
 0x21d   :  { %v484_v38 = vmul.f32 %v399_v37, %v375_v50  ;;  %v508_v39 = vmul.f32 %v440_v52, %v399_v37  ;;  %v464_v40 = vpop.f32.mrf.mxu1 }
 0x21e   :  { %v492_v41 = vmul.f32 %v464_v40, %v440_v52  ;;  %v516_v42 = vmul.f32 %v464_v40, %v375_v50 }
 0x220   :  { %v500_v43 = vadd.f32 %v492_v41, %v484_v38  ;;  %v524_v44 = vsub.f32 %v508_v39, %v516_v42 }
 0x222   :  { %721 = vmatmul.msk.f32.gmra.mxu2 %vm56_vm0, %v500_v43 }
 0x224   :  { %v402_v45 = vpop.f32.mrf.mxu0 }
 0x225   :  { %v485_v46 = vmul.f32 %v402_v45, %v1084_v53  ;;  %v509_v48 = vmul.f32 %v443_v55, %v402_v45  ;;  %v467_v49 = vpop.f32.mrf.mxu1 }
 0x226   :  { %v493_v47 = vmul.f32 %v467_v49, %v443_v55  ;;  %v517_v51 = vmul.f32 %v467_v49, %v1084_v53 }
 0x228   :  { %v501_v54 = vadd.f32 %v493_v47, %v485_v46  ;;  %v525_v58 = vsub.f32 %v509_v48, %v517_v51 }
 0x22a   :  { %722 = vmatmul.msk.f32.gmra.mxu2 %vm56_vm0, %v501_v54  ;;  %730 = vmatmul.msk.f32.vlgmr.msra.gmra.mxu3 %vm56_vm0, %v525_v58 }
 0x22c   :  { %v405_v52 = vpop.f32.mrf.mxu0 }
 0x22d   :  { %v486_v50 = vmul.f32 %v405_v52, %v1086_v56  ;;  %v510_v59 = vmul.f32 %v1088_v57, %v405_v52  ;;  %v470_v60 = vpop.f32.mrf.mxu1 }
 0x22e   :  { %v494_v61 = vmul.f32 %v470_v60, %v1088_v57  ;;  %v518_v0 = vmul.f32 %v470_v60, %v1086_v56 }
 0x230   :  { %v502_v3 = vadd.f32 %v494_v61, %v486_v50  ;;  %v526_v55 = vsub.f32 %v510_v59, %v518_v0 }
 0x232   :  { %723 = vmatmul.msk.f32.gmra.mxu2 %vm56_vm0, %v502_v3  ;;  %731 = vmatmul.msk.f32.gmra.mxu3 %vm56_vm0, %v526_v55 }
 0x23a   :  { %724 = vmatmul.msk.f32.gmra.mxu2 %vm56_vm0, %v1094_v1  ;;  %732 = vmatmul.msk.f32.gmra.mxu3 %vm56_vm0, %v527_v2 }
 0x242   :  { %725 = vmatmul.msk.f32.gmra.mxu2 %vm56_vm0, %v504_v10  ;;  %733 = vmatmul.msk.f32.gmra.mxu3 %vm56_vm0, %v528_v11 }
 0x24a   :  { %726 = vmatmul.msk.f32.gmra.mxu2 %vm56_vm0, %v505_v19  ;;  %734 = vmatmul.msk.f32.gmra.mxu3 %vm56_vm0, %v529_v20 }
 0x252   :  { %727 = vmatmul.msk.f32.gmra.mxu2 %vm56_vm0, %v522_v28 }
 0x25a   :  { %728 = vmatmul.msk.f32.gmra.mxu2 %vm56_vm0, %v523_v36 }
 0x262   :  { %729 = vmatmul.msk.f32.gmra.mxu2 %vm56_vm0, %v524_v44 }
 0x295   :  { %v609_v53 = vpop.f32.mrf.mxu2 }
 0x296   :  { %658 = vst [vmem:[%s1189_s11 + $0x8] sm:$0xff] %v609_v53 }
 0x29d   :  { %v612_v56 = vpop.f32.mrf.mxu2 }
 0x29e   :  { %659 = vst [vmem:[%s1189_s11 + $0x10] sm:$0xff] %v612_v56 }
 0x2a5   :  { %v615_v57 = vpop.f32.mrf.mxu2 }
 0x2a6   :  { %660 = vst [vmem:[%s1189_s11 + $0x18] sm:$0xff] %v615_v57 }
 0x2ad   :  { %v618_v62 = vpop.f32.mrf.mxu2  ;;  %v642_v63 = vpop.f32.mrf.mxu3 }
 0x2ae   :  { %661 = vst [vmem:[%s1189_s11 + $0x20] sm:$0xff] %v618_v62 }
 0x2af   :  { %669 = vst [vmem:[%s1189_s11 + $0x60] sm:$0xff] %v642_v63 }
 0x2b5   :  { %v621_v1 = vpop.f32.mrf.mxu2  ;;  %v645_v2 = vpop.f32.mrf.mxu3 }
 0x2b6   :  { %662 = vst [vmem:[%s1189_s11 + $0x28] sm:$0xff] %v621_v1 }
 0x2b7   :  { %670 = vst [vmem:[%s1189_s11 + $0x68] sm:$0xff] %v645_v2 }
 0x2bd   :  { %v624_v4 = vpop.f32.mrf.mxu2  ;;  %v648_v5 = vpop.f32.mrf.mxu3 }
 0x2be   :  { %663 = vst [vmem:[%s1189_s11 + $0x30] sm:$0xff] %v624_v4 }
 0x2bf   :  { %671 = vst [vmem:[%s1189_s11 + $0x70] sm:$0xff] %v648_v5 }
 0x2c5   :  { %v627_v6 = vpop.f32.mrf.mxu2  ;;  %v651_v7 = vpop.f32.mrf.mxu3 }
 0x2c6   :  { %664 = vst [vmem:[%s1189_s11 + $0x38] sm:$0xff] %v627_v6 }
 0x2c7   :  { %672 = vst [vmem:[%s1189_s11 + $0x78] sm:$0xff] %v651_v7 }
 0x2cd   :  { %v630_v8 = vpop.f32.mrf.mxu2  ;;  %v654_v9 = vpop.f32.mrf.mxu3 }
 0x2ce   :  { %665 = vst [vmem:[%s1189_s11 + $0x40] sm:$0xff] %v630_v8 }
 0x2cf   :  { %673 = vst [vmem:[%s1189_s11 + $0x80] sm:$0xff] %v654_v9 }
 0x2d5   :  { %v633_v10 = vpop.f32.mrf.mxu2 }
 0x2d6   :  { %666 = vst [vmem:[%s1189_s11 + $0x48] sm:$0xff] %v633_v10 }
 0x2dd   :  { %v636_v11 = vpop.f32.mrf.mxu2 }
 0x2de   :  { %667 = vst [vmem:[%s1189_s11 + $0x50] sm:$0xff] %v636_v11 }
 0x2e5   :  { %v639_v12 = vpop.f32.mrf.mxu2 }
 0x2e6   :  { %668 = vst [vmem:[%s1189_s11 + $0x58] sm:$0xff] %v639_v12 }

</bundles_post_ra>
